<compile_context>
chip_gen: v7x
topology: tpu7x:2x2x1
jax: 0.10.0
libtpu: 0.0.40
codegen_flags: <defaults>
</compile_context>

<pallas_src>
import functools

import jax
import jax.numpy as jnp
from jax import lax
from jax.experimental import pallas as pl
from jax.experimental.pallas import tpu as pltpu

LANES = 128
MAX_BLOCK_ROWS = 1024  # (1024, 128) f32 block = 512 KiB per input per grid step


def _bpr_partial_kernel(pos_ref, neg_ref, out_ref, *, gamma, total_n,
                        block_rows, needs_mask):
    # Hot path: elementwise diff -> sigmoid -> log, all hidden under the DMA.
    diff = pos_ref[...].astype(jnp.float32) - neg_ref[...].astype(jnp.float32)
    val = -jnp.log(gamma + jax.nn.sigmoid(diff))

    if needs_mask:
        # Zero out padded tail elements (only compiled in when padding exists).
        row_ids = lax.broadcasted_iota(jnp.int32, (block_rows, LANES), 0)
        lane_ids = lax.broadcasted_iota(jnp.int32, (block_rows, LANES), 1)
        flat_idx = (pl.program_id(0) * block_rows + row_ids) * LANES + lane_ids
        val = jnp.where(flat_idx < total_n, val, 0.0)

    # Lane-dense partial sum: reduce only along sublanes (VPU adds), keep the
    # 128-wide lane axis.  Final cross-lane reduce happens once in the wrapper.
    out_ref[...] = jnp.sum(val, axis=0, keepdims=True)


def bpr_loss(pos_score, neg_score, gamma=1e-10):
    """Pallas TPU implementation of BPRLoss.forward.

    pos_score, neg_score: 1-D float arrays of identical shape (B,), any B.
    Returns a scalar float32 loss.
    """
    assert pos_score.shape == neg_score.shape
    assert pos_score.ndim == 1
    B = int(pos_score.shape[0])

    # Layout: reshape to (rows, 128); pad rows to a multiple of 8 (sublane
    # tiling).  For large inputs, tile rows in blocks of MAX_BLOCK_ROWS.
    rows = pl.cdiv(B, LANES)
    rows = ((rows + 7) // 8) * 8
    if rows <= MAX_BLOCK_ROWS:
        block_rows = rows  # single-block grid for small inputs
    else:
        block_rows = MAX_BLOCK_ROWS
        rows = ((rows + block_rows - 1) // block_rows) * block_rows
    padded = rows * LANES
    needs_mask = padded != B

    def to2d(x):
        if padded != B:
            x = jnp.pad(x, (0, padded - B))
        return x.reshape(rows, LANES)

    pos2d = to2d(pos_score)
    neg2d = to2d(neg_score)

    num_blocks = rows // block_rows

    # 2 inputs x 2 pipeline buffers x block bytes, plus headroom.
    block_bytes = block_rows * LANES * pos2d.dtype.itemsize
    vmem_limit = int(max(16 * 1024 * 1024, 4 * block_bytes + 2 * 1024 * 1024))

    kernel = functools.partial(
        _bpr_partial_kernel,
        gamma=float(gamma),
        total_n=B,
        block_rows=block_rows,
        needs_mask=needs_mask,
    )

    partials = pl.pallas_call(
        kernel,
        out_shape=jax.ShapeDtypeStruct((num_blocks, LANES), jnp.float32),
        grid_spec=pl.GridSpec(
            grid=(num_blocks,),
            in_specs=[
                pl.BlockSpec((block_rows, LANES), lambda i: (i, 0)),
                pl.BlockSpec((block_rows, LANES), lambda i: (i, 0)),
            ],
            # Each grid step owns its own lane-dense output row -> "parallel"
            # axis (uses both TensorCores on v7x).
            out_specs=pl.BlockSpec((1, LANES), lambda i: (i, 0)),
        ),
        compiler_params=pltpu.CompilerParams(
            dimension_semantics=("parallel",),
            vmem_limit_bytes=vmem_limit,
        ),
    )(pos2d, neg2d)

    # Final cross-lane / cross-block reduce + mean (tiny, done in plain JAX).
    return jnp.sum(partials) * (1.0 / B)


if __name__ == "__main__":
    key = jax.random.PRNGKey(0)
    k1, k2, k3, k4 = jax.random.split(key, 4)
    gamma = 1e-10  # config.loss.gamma (deterministic synthetic config)

    # Main case: B = 2048 score pairs (single-block fast path).
    B = 2048
    pos_score = jax.random.normal(k1, (B,), dtype=jnp.float32)
    neg_score = jax.random.normal(k2, (B,), dtype=jnp.float32)
    loss = bpr_loss(pos_score, neg_score, gamma=gamma)
    jax.block_until_ready(loss)
    ref = -jnp.mean(jnp.log(gamma + jax.nn.sigmoid(pos_score - neg_score)))
    assert jnp.allclose(loss, ref, rtol=1e-5, atol=1e-6), (loss, ref)

    # Ragged case: exercises the padded/masked path.
    B2 = 1000
    pos2 = jax.random.normal(k3, (B2,), dtype=jnp.float32)
    neg2 = jax.random.normal(k4, (B2,), dtype=jnp.float32)
    loss2 = bpr_loss(pos2, neg2, gamma=gamma)
    jax.block_until_ready(loss2)
    ref2 = -jnp.mean(jnp.log(gamma + jax.nn.sigmoid(pos2 - neg2)))
    assert jnp.allclose(loss2, ref2, rtol=1e-5, atol=1e-6), (loss2, ref2)

    print("KERNEL_OK")
</pallas_src>

<mosaic_0001>
module attributes {stable_mosaic.version = 11 : i64} {
  func.func @_bpr_partial_kernel(%arg0: i32, %arg1: memref<16x128xf32, #tpu.memory_space<vmem>>, %arg2: memref<16x128xf32, #tpu.memory_space<vmem>>, %arg3: memref<1x128xf32, #tpu.memory_space<vmem>>) attributes {dimension_semantics = [#tpu.dimension_semantics<parallel>], iteration_bounds = array<i64: 1>, scalar_prefetch = 0 : i64, scratch_operands = 0 : i64, tpu.core_type = #tpu.core_type<tc>, window_params = [{transform_indices = @transform_0, window_bounds = array<i64: 16, 128>}, {transform_indices = @transform_1, window_bounds = array<i64: 16, 128>}, {transform_indices = @transform_2, window_bounds = array<i64: 1, 128>}]} {
    %c0 = arith.constant 0 : index
    %c0_0 = arith.constant 0 : index
    %0 = vector.load %arg1[%c0, %c0_0] : memref<16x128xf32, #tpu.memory_space<vmem>>, vector<16x128xf32>
    %c0_1 = arith.constant 0 : index
    %c0_2 = arith.constant 0 : index
    %1 = vector.load %arg2[%c0_1, %c0_2] : memref<16x128xf32, #tpu.memory_space<vmem>>, vector<16x128xf32>
    %2 = arith.subf %0, %1 : vector<16x128xf32>
    %3 = arith.negf %2 : vector<16x128xf32>
    %4 = math.exp %3 : vector<16x128xf32>
    %cst = arith.constant 1.000000e+00 : f32
    %5 = vector.broadcast %cst : f32 to vector<16x128xf32>
    %6 = arith.addf %5, %4 : vector<16x128xf32>
    %7 = arith.divf %5, %6 : vector<16x128xf32>
    %cst_3 = arith.constant 1.000000e-10 : f32
    %8 = vector.broadcast %cst_3 : f32 to vector<16x128xf32>
    %9 = arith.addf %8, %7 : vector<16x128xf32>
    %10 = math.log %9 : vector<16x128xf32>
    %cst_4 = arith.constant 0.000000e+00 : f32
    %11 = vector.broadcast %cst_4 : f32 to vector<16x128xf32>
    %12 = arith.subf %11, %10 : vector<16x128xf32>
    %cst_5 = arith.constant dense<0.000000e+00> : vector<128xf32>
    %13 = vector.multi_reduction <add>, %12, %cst_5 [0] : vector<16x128xf32> to vector<128xf32>
    %14 = vector.shape_cast %13 : vector<128xf32> to vector<1x128xf32>
    %c0_6 = arith.constant 0 : index
    %c0_7 = arith.constant 0 : index
    %15 = vector.load %arg3[%c0_6, %c0_7] : memref<1x128xf32, #tpu.memory_space<vmem>>, vector<1x128xf32>
    tpu.vector_store %arg3[%c0_6, %c0_7], %14 {strides = array<i32>} : memref<1x128xf32, #tpu.memory_space<vmem>>, vector<1x128xf32>,
    return
  }
  func.func @transform_0(%arg0: i32) -> (i32, i32) {
    %c0_i32 = arith.constant 0 : i32
    %c0_i32_0 = arith.constant 0 : i32
    return %arg0, %c0_i32 : i32, i32
  }
  func.func @transform_1(%arg0: i32) -> (i32, i32) {
    %c0_i32 = arith.constant 0 : i32
    %c0_i32_0 = arith.constant 0 : i32
    return %arg0, %c0_i32 : i32, i32
  }
  func.func @transform_2(%arg0: i32) -> (i32, i32) {
    %c0_i32 = arith.constant 0 : i32
    %c0_i32_0 = arith.constant 0 : i32
    return %arg0, %c0_i32 : i32, i32
  }
}

</mosaic_0001>

<bundles_post_ra>
// kernel: tpu_custom_call.1
= control target key start
LH: loop header
LB: loop body
LE: loop exit
PB: predicated region body
PF: predicated region fallthrough
CT: control target
= control target key end

     0   :  { %7 = vsyncpa [#allocation3], 0  ;;  %s237_s0 = inlined_call_operand.hbm [shape: f32[16,128], index: 0, kind: input, shape index: {}]   ;;  %s238_s1 = inlined_call_operand.hbm [shape: f32[16,128], index: 1, kind: input, shape index: {}]   ;;  %s239_s2 = inlined_call_operand.hbm [shape: f32[1,128], index: 2, kind: output, shape index: {}]  }
   0x1   :  { %8 = vsyncpa [#allocation6], 0 }
   0x2   :  { %9 = vsyncpa [#allocation4], 0  ;;  %s181_s9 = smov [#allocation2]   ;;  %s109_s13 = scalar_lea.hbm %s237_s0, 256 }
   0x3   :  { %s15_s10 = sshll.u32 %s181_s9, 4  ;;  %p110_p0 = scmp.ne.s32.totalorder %s237_s0, %s109_s13  ;;  %s16_s10 = int_to_ptr.vmem [resolvable:$true] %s15_s10 }
   0x4   :  { %p113_p1 = scmp.lt.u32.totalorder %s109_s13, %s237_s0 }
   0x6   :  { %p115_p2 = pnand %p113_p1, %p110_p0 }
   0x8   :  { %118 = shalt.err (!%p115_p2)
}
   0x9   :  { %s119_s18 = scalar_lea.vmem %s16_s10, 256  ;;  %p124_p4 = scmp.lt.s32.totalorder %s16_s10, %s16_s10 }
   0xa   :  { %p120_p3 = scmp.ne.s32.totalorder %s16_s10, %s119_s18  ;;  %p125_p5 = scmp.lt.s32.totalorder %s119_s18, %s119_s18 }
   0xc   :  { %p126_p6 = por %p125_p5, %p124_p4 }
   0xe   :  { %p127_p7 = pnand %p126_p6, %p120_p3 }
  0x10   :  { %130 = shalt.err (!%p127_p7)
}
  0x11   :  { %s182_s19 = smov 128   ;;  %s183_s20 = smov 8  }
  0x12   :  { %21 = dma.hbm_to_vmem [thread:$0]  %s237_s0, 256, %s16_s10, [#allocation3], %s182_s19, %s182_s19, %s183_s20  }
  0x13   :  { %s184_s23 = smov [#allocation5]   ;;  %s131_s27 = scalar_lea.hbm %s238_s1, 256 }
  0x14   :  { %s27_s24 = sshll.u32 %s184_s23, 4  ;;  %p132_p8 = scmp.ne.s32.totalorder %s238_s1, %s131_s27  ;;  %s28_s24 = int_to_ptr.vmem [resolvable:$true] %s27_s24 }
  0x15   :  { %p135_p9 = scmp.lt.u32.totalorder %s131_s27, %s238_s1 }
  0x17   :  { %p137_p10 = pnand %p135_p9, %p132_p8 }
  0x19   :  { %140 = shalt.err (!%p137_p10)
}
  0x1a   :  { %s141_s4 = scalar_lea.vmem %s28_s24, 256  ;;  %p146_p12 = scmp.lt.s32.totalorder %s28_s24, %s28_s24 }
  0x1b   :  { %p142_p11 = scmp.ne.s32.totalorder %s28_s24, %s141_s4  ;;  %p147_p13 = scmp.lt.s32.totalorder %s141_s4, %s141_s4 }
  0x1d   :  { %p148_p0 = por %p147_p13, %p146_p12 }
  0x1f   :  { %p149_p1 = pnand %p148_p0, %p142_p11 }
  0x21   :  { %152 = shalt.err (!%p149_p1)
}
  0x22   :  { %33 = dma.hbm_to_vmem [thread:$0]  %s238_s1, 256, %s28_s24, [#allocation6], %s182_s19, %s182_s19, %s183_s20  }
  0x23   :  { %175 = dma.done.wait [#allocation3], 256  }
  0x24   :  { %176 = vsyncadd [#allocation3], 4294967040 }
  0x25   :  { %177 = dma.done.wait [#allocation6], 256  }
  0x26   :  { %178 = vsyncadd [#allocation6], 4294967040  ;;  %v40_v0 = vld [vmem:[#allocation2] sm:$0xff]  ;;  %v41_v1 = vld [vmem:[#allocation2 + $0x8] sm:$0xff]  ;;  %s185_s1 = smov [#allocation7]  }
  0x27   :  { %v42_v2 = vld [vmem:[#allocation5] sm:$0xff]  ;;  %v43_v3 = vld [vmem:[#allocation5 + $0x8] sm:$0xff]  ;;  %s80_s6 = sshll.u32 %s185_s1, 4  ;;  %s81_s6 = int_to_ptr.vmem [resolvable:$true] %s80_s6 }
  0x28   :  { %v44_v4 = vsub.f32 %v40_v0, %v42_v2  ;;  %v45_v5 = vsub.f32 %v41_v1, %v43_v3  ;;  %s153_s7 = scalar_lea.vmem %s81_s6, 16  ;;  %s157_s8 = scalar_lea.vmem %s81_s6, 32 }
  0x29   :  { %p154_p2 = scmp.ne.s32.totalorder %s81_s6, %s153_s7  ;;  %p158_p3 = scmp.lt.s32.totalorder %s81_s6, %s81_s6 }
  0x2a   :  { %v90_v6 = vmul.f32 -1.442695, %v44_v4  ;;  %v91_v7 = vmul.f32 -1.442695, %v45_v5  ;;  %p159_p4 = scmp.lt.s32.totalorder %s157_s8, %s153_s7 }
  0x2c   :  { %97 = vpow2.f32 %v90_v6  ;;  %p160_p5 = por %p159_p4, %p158_p3 }
  0x2d   :  { %99 = vpow2.f32 %v91_v7 }
  0x2e   :  { %p161_p6 = pnand %p160_p5, %p154_p2 }
  0x36   :  { %v98_v8 = vpop.eup %97 }
  0x37   :  { %v100_v9 = vpop.eup %99  ;;  %v52_v10 = vadd.f32 1.0, %v98_v8 }
  0x38   :  { %v53_v11 = vadd.f32 1.0, %v100_v9 }
  0x39   :  { %101 = vrcp.f32 %v52_v10 }
  0x3a   :  { %103 = vrcp.f32 %v53_v11 }
  0x43   :  { %v102_v12 = vpop.eup %101 }
  0x44   :  { %v104_v13 = vpop.eup %103  ;;  %v58_v14 = vadd.f32 1e-10, %v102_v12 }
  0x45   :  { %v59_v15 = vadd.f32 1e-10, %v104_v13 }
  0x46   :  { %105 = vlog2.f32 %v58_v14 }
  0x47   :  { %107 = vlog2.f32 %v59_v15 }
  0x50   :  { %v106_v16 = vpop.eup %105 }
  0x51   :  { %v108_v17 = vpop.eup %107  ;;  %v61_v18 = vmul.f32 0.6931472, %v106_v16 }
  0x52   :  { %v63_v19 = vmul.f32 0.6931472, %v108_v17 }
  0x53   :  { %v64_v20 = vsub.f32 0.0, %v61_v18 }
  0x54   :  { %v65_v21 = vsub.f32 0.0, %v63_v19 }
  0x56   :  { %v66_v22 = vadd.f32 %v65_v21, %v64_v20 }
  0x58   :  { %v67_v23 = vrot.slane %v66_v22, 4 }
  0x5a   :  { %v68_v24 = vadd.f32 %v67_v23, %v66_v22 }
  0x5c   :  { %v69_v25 = vrot.slane %v68_v24, 2 }
  0x5e   :  { %v70_v26 = vadd.f32 %v69_v25, %v68_v24 }
  0x60   :  { %v71_v27 = vrot.slane %v70_v26, 1 }
  0x62   :  { %v72_v28 = vadd.f32 %v71_v27, %v70_v26 }
  0x64   :  { %73 = vst [vmem:[#allocation7] sm:$0x1] %v72_v28 }
  0x65   :  { %164 = shalt.err (!%p161_p6)
}
  0x66   :  { %s165_s11 = scalar_lea.hbm %s239_s2, 16 }
  0x67   :  { %p166_p7 = scmp.ne.s32.totalorder %s239_s2, %s165_s11  ;;  %p169_p8 = scmp.lt.u32.totalorder %s165_s11, %s239_s2 }
  0x69   :  { %p171_p9 = pnand %p169_p8, %p166_p7 }
  0x6b   :  { %174 = shalt.err (!%p171_p9)
}
  0x6c   :  { %83 = dma.vmem_to_hbm [thread:$0]  %s81_s6, 16, %s239_s2, [#allocation4]  }
  0x6d   :  { %179 = dma.done.wait [#allocation4], 16  }
  0x6e   :  { %180 = vsyncadd [#allocation4], 4294967280 }
  0x6f   :  { %87 = vsyncpa [#allocation3], 1 }
  0x70   :  { %88 = vsyncpa [#allocation6], 1 }
  0x71   :  { %89 = vsyncpa [#allocation4], 1 }

</bundles_post_ra>
